<compile_context>
chip_gen: v6e
topology: v6e:2x2x1
jax: 0.10.0
libtpu: 0.0.40
codegen_flags: <defaults>
</compile_context>

<pallas_src>
import functools

import jax
import jax.numpy as jnp
from jax.experimental import pallas as pl
from jax.experimental.pallas import tpu as pltpu


def _round_up(x, m):
    return (x + m - 1) // m * m


def _prograd_loss_kernel(stu_ref, tea_ref, tgt_ref,
                         xe_ref, kl_ref, prob_ref,
                         xe_acc, s_acc, *, T, n_valid, block_rows):
    i = pl.program_id(0)

    @pl.when(i == 0)
    def _():
        xe_acc[...] = jnp.zeros_like(xe_acc)
        s_acc[...] = jnp.zeros_like(s_acc)

    stu = stu_ref[...].astype(jnp.float32)          # [TN, C]
    tea = tea_ref[...].astype(jnp.float32)          # [TN, C]
    t0 = tgt_ref[...].astype(jnp.float32)           # [TN, 1]

    # Mask for padded rows (batch padded to a multiple of block_rows).
    row = jax.lax.broadcasted_iota(jnp.int32, (block_rows, 1), 0) + i * block_rows
    valid = (row < n_valid).astype(jnp.float32)     # [TN, 1]

    # ---- softmax / log-softmax of stu_logits (temperature 1) -------------
    m = jnp.max(stu, axis=-1, keepdims=True)        # [TN, 1]
    e = jnp.exp(stu - m)                            # [TN, C]
    denom = jnp.sum(e, axis=-1, keepdims=True)      # [TN, 1]
    probs = e * pl.reciprocal(denom, approx=False)  # [TN, C]
    prob_ref[...] = probs.astype(prob_ref.dtype)

    log_p = (stu - m) - jnp.log(denom)              # [TN, C] log-softmax (stable)

    # ---- binary cross-entropy on classes 0/1 ------------------------------
    per_sample = t0 * log_p[:, 0:1] + (1.0 - t0) * log_p[:, 1:2]   # [TN, 1]
    xe_acc[...] += jnp.sum(per_sample * valid, keepdims=True)      # [1, 1]

    # ---- KL-style distillation term ---------------------------------------
    inv_T = 1.0 / T
    stu_t = stu * inv_T
    tea_t = tea * inv_T

    mt = jnp.max(tea_t, axis=-1, keepdims=True)
    et = jnp.exp(tea_t - mt)
    tea_prob = et * pl.reciprocal(jnp.sum(et, axis=-1, keepdims=True),
                                  approx=False)                    # [TN, C]

    ms = jnp.max(stu_t, axis=-1, keepdims=True)
    log_softmax_stu_t = (stu_t - ms) - jnp.log(
        jnp.sum(jnp.exp(stu_t - ms), axis=-1, keepdims=True))      # [TN, C]

    # Constants (-T^2, 1/N) are factored out; accumulate only the raw sum.
    s_acc[...] += jnp.sum(tea_prob * log_softmax_stu_t * valid, keepdims=True)

    @pl.when(i == pl.num_programs(0) - 1)
    def _():
        xe_ref[...] = -xe_acc[...] / n_valid
        kl_ref[...] = -(T * T) * s_acc[...] / n_valid


def prograd_loss(stu_logits, tea_logits, target, T, block_rows=512):
    """Pallas implementation of ProGradLoss.forward."""
    N, C = stu_logits.shape
    assert tea_logits.shape == (N, C)
    assert target.shape[0] == N and target.shape[1] >= 1
    assert C >= 2

    # Only target[:, 0] is consumed; slice it wrapper-side to cut HBM traffic.
    tgt0 = target[:, :1].astype(jnp.float32)        # [N, 1]

    # Row tile: multiple of 8 sublanes; large enough to amortize per-step
    # overhead but small enough that 3 double-buffered (TN, C) f32 blocks stay
    # well inside the default scoped-VMEM limit on every generation (incl. v7x).
    TN = min(int(block_rows), _round_up(N, 8))
    TN = _round_up(TN, 8)
    Npad = _round_up(N, TN)
    if Npad != N:
        pad = ((0, Npad - N), (0, 0))
        stu_logits = jnp.pad(stu_logits, pad)
        tea_logits = jnp.pad(tea_logits, pad)
        tgt0 = jnp.pad(tgt0, pad)
    grid = (Npad // TN,)

    kernel = functools.partial(_prograd_loss_kernel,
                               T=float(T), n_valid=N, block_rows=TN)

    xe, kl, probs = pl.pallas_call(
        kernel,
        out_shape=(
            jax.ShapeDtypeStruct((1, 1), jnp.float32),      # xe_loss
            jax.ShapeDtypeStruct((1, 1), jnp.float32),      # kl_loss
            jax.ShapeDtypeStruct((Npad, C), jnp.float32),   # softmax(stu)
        ),
        grid_spec=pltpu.PrefetchScalarGridSpec(
            num_scalar_prefetch=0,
            grid=grid,
            in_specs=[
                pl.BlockSpec((TN, C), lambda i: (i, 0)),    # stu rows
                pl.BlockSpec((TN, C), lambda i: (i, 0)),    # tea rows
                pl.BlockSpec((TN, 1), lambda i: (i, 0)),    # target column 0
            ],
            out_specs=(
                pl.BlockSpec((1, 1), lambda i: (0, 0)),     # xe (resident acc)
                pl.BlockSpec((1, 1), lambda i: (0, 0)),     # kl (resident acc)
                pl.BlockSpec((TN, C), lambda i: (i, 0)),    # probs rows
            ),
            scratch_shapes=[
                pltpu.VMEM((1, 1), jnp.float32),            # running xe sum
                pltpu.VMEM((1, 1), jnp.float32),            # running kl raw sum
            ],
        ),
        compiler_params=pltpu.CompilerParams(
            dimension_semantics=("arbitrary",)),            # reduction axis
    )(stu_logits, tea_logits, tgt0)

    return xe[0, 0], kl[0, 0], probs[:N]


def _reference(stu, tea, tgt, T):
    """Pure-JAX reference mirroring the PyTorch forward."""
    probs = jax.nn.softmax(stu, axis=-1)
    n = stu.shape[0]
    xe = -jnp.sum(tgt[:, 0] * jnp.log(probs[:, 0])
                  + (1 - tgt[:, 0]) * jnp.log(probs[:, 1])) / n
    tea_prob = jax.nn.softmax(tea / T, axis=-1)
    kl = -tea_prob * jax.nn.log_softmax(stu / T, axis=-1) * T ** 2
    kl = kl.sum(axis=1).mean()
    return xe, kl, probs


if __name__ == "__main__":
    key = jax.random.PRNGKey(0)
    k1, k2, k3 = jax.random.split(key, 3)

    N, C = 8, 4      # batch=8, num_classes=4
    T = 2.0          # distillation temperature (ProGradLoss(T=2.0))

    stu_logits = jax.random.normal(k1, (N, C), dtype=jnp.float32)
    tea_logits = jax.random.normal(k2, (N, C), dtype=jnp.float32)
    # target[:, 0] is the binary label used by the loss; build a 0/1 one-hot-ish target.
    labels = jax.random.bernoulli(k3, 0.5, (N,)).astype(jnp.float32)
    target = jnp.stack([labels, 1.0 - labels] + [jnp.zeros((N,))] * (C - 2), axis=1)

    xe, kl, probs = prograd_loss(stu_logits, tea_logits, target, T)
    jax.block_until_ready((xe, kl, probs))

    xe_ref, kl_ref, probs_ref = _reference(stu_logits, tea_logits, target, T)
    assert jnp.allclose(xe, xe_ref, atol=1e-5, rtol=1e-5), (xe, xe_ref)
    assert jnp.allclose(kl, kl_ref, atol=1e-5, rtol=1e-5), (kl, kl_ref)
    assert jnp.allclose(probs, probs_ref, atol=1e-6, rtol=1e-6)

    print("KERNEL_OK")
</pallas_src>

<mosaic_0001>
module attributes {stable_mosaic.version = 11 : i64} {
  func.func @_prograd_loss_kernel(%arg0: i32, %arg1: memref<8x4xf32, #tpu.memory_space<vmem>>, %arg2: memref<8x4xf32, #tpu.memory_space<vmem>>, %arg3: memref<8x1xf32, #tpu.memory_space<vmem>>, %arg4: memref<1x1xf32, #tpu.memory_space<vmem>>, %arg5: memref<1x1xf32, #tpu.memory_space<vmem>>, %arg6: memref<8x4xf32, #tpu.memory_space<vmem>>, %arg7: memref<1x1xf32, #tpu.memory_space<vmem>>, %arg8: memref<1x1xf32, #tpu.memory_space<vmem>>) attributes {dimension_semantics = [#tpu.dimension_semantics<arbitrary>], iteration_bounds = array<i64: 1>, scalar_prefetch = 0 : i64, scratch_operands = 2 : i64, tpu.core_type = #tpu.core_type<tc>, window_params = [{transform_indices = @transform_0, window_bounds = array<i64: 8, 4>}, {transform_indices = @transform_1, window_bounds = array<i64: 8, 4>}, {transform_indices = @transform_2, window_bounds = array<i64: 8, 1>}, {pipeline_mode = #tpu.pipeline_mode<synchronous>, transform_indices = @transform_3, window_bounds = array<i64: 1, 1>}, {pipeline_mode = #tpu.pipeline_mode<synchronous>, transform_indices = @transform_4, window_bounds = array<i64: 1, 1>}, {transform_indices = @transform_5, window_bounds = array<i64: 8, 4>}]} {
    %c0_i32 = arith.constant 0 : i32
    %0 = arith.cmpi eq, %arg0, %c0_i32 : i32
    %1 = arith.extui %0 : i1 to i32
    %c0_i32_0 = arith.constant 0 : i32
    %2 = arith.cmpi ne, %1, %c0_i32_0 : i32
    scf.if %2 {
      %cst_29 = arith.constant 0.000000e+00 : f32
      %86 = vector.broadcast %cst_29 : f32 to vector<1x1xf32>
      %c0_30 = arith.constant 0 : index
      %c0_31 = arith.constant 0 : index
      %87 = vector.load %arg7[%c0_30, %c0_31] : memref<1x1xf32, #tpu.memory_space<vmem>>, vector<1x1xf32>
      tpu.vector_store %arg7[%c0_30, %c0_31], %86 {strides = array<i32>} : memref<1x1xf32, #tpu.memory_space<vmem>>, vector<1x1xf32>,
      %cst_32 = arith.constant 0.000000e+00 : f32
      %88 = vector.broadcast %cst_32 : f32 to vector<1x1xf32>
      %c0_33 = arith.constant 0 : index
      %c0_34 = arith.constant 0 : index
      %89 = vector.load %arg8[%c0_33, %c0_34] : memref<1x1xf32, #tpu.memory_space<vmem>>, vector<1x1xf32>
      tpu.vector_store %arg8[%c0_33, %c0_34], %88 {strides = array<i32>} : memref<1x1xf32, #tpu.memory_space<vmem>>, vector<1x1xf32>,
    } else {
    }
    %c0 = arith.constant 0 : index
    %c0_1 = arith.constant 0 : index
    %3 = vector.load %arg1[%c0, %c0_1] : memref<8x4xf32, #tpu.memory_space<vmem>>, vector<8x4xf32>
    %c0_2 = arith.constant 0 : index
    %c0_3 = arith.constant 0 : index
    %4 = vector.load %arg2[%c0_2, %c0_3] : memref<8x4xf32, #tpu.memory_space<vmem>>, vector<8x4xf32>
    %c0_4 = arith.constant 0 : index
    %c0_5 = arith.constant 0 : index
    %5 = vector.load %arg3[%c0_4, %c0_5] : memref<8x1xf32, #tpu.memory_space<vmem>>, vector<8x1xf32>
    %6 = tpu.iota {dimensions = array<i32: 0>} : vector<8x1xi32>
    %c8_i32 = arith.constant 8 : i32
    %7 = arith.muli %arg0, %c8_i32 : i32
    %8 = vector.broadcast %7 : i32 to vector<8x1xi32>
    %9 = arith.addi %6, %8 : vector<8x1xi32>
    %c8_i32_6 = arith.constant 8 : i32
    %10 = vector.broadcast %c8_i32_6 : i32 to vector<8x1xi32>
    %11 = arith.cmpi slt, %9, %10 : vector<8x1xi32>
    %12 = arith.extui %11 : vector<8x1xi1> to vector<8x1xi32>
    %13 = arith.sitofp %12 : vector<8x1xi32> to vector<8x1xf32>
    %cst = arith.constant dense<0xFF800000> : vector<8xf32>
    %14 = vector.multi_reduction <maximumf>, %3, %cst [1] : vector<8x4xf32> to vector<8xf32>
    %15 = vector.shape_cast %14 : vector<8xf32> to vector<8x1xf32>
    %16 = vector.broadcast %15 : vector<8x1xf32> to vector<8x4xf32>
    %17 = arith.subf %3, %16 : vector<8x4xf32>
    %18 = math.exp %17 : vector<8x4xf32>
    %cst_7 = arith.constant dense<0.000000e+00> : vector<8xf32>
    %19 = vector.multi_reduction <add>, %18, %cst_7 [1] : vector<8x4xf32> to vector<8xf32>
    %20 = vector.shape_cast %19 : vector<8xf32> to vector<8x1xf32>
    %21 = tpu.reciprocal %20 : vector<8x1xf32> -> vector<8x1xf32>
    %22 = vector.broadcast %21 : vector<8x1xf32> to vector<8x4xf32>
    %23 = arith.mulf %18, %22 : vector<8x4xf32>
    %c0_8 = arith.constant 0 : index
    %c0_9 = arith.constant 0 : index
    %24 = vector.load %arg6[%c0_8, %c0_9] : memref<8x4xf32, #tpu.memory_space<vmem>>, vector<8x4xf32>
    tpu.vector_store %arg6[%c0_8, %c0_9], %23 {strides = array<i32>} : memref<8x4xf32, #tpu.memory_space<vmem>>, vector<8x4xf32>,
    %25 = vector.broadcast %15 : vector<8x1xf32> to vector<8x4xf32>
    %26 = arith.subf %3, %25 : vector<8x4xf32>
    %27 = math.log %20 : vector<8x1xf32>
    %28 = vector.broadcast %27 : vector<8x1xf32> to vector<8x4xf32>
    %29 = arith.subf %26, %28 : vector<8x4xf32>
    %30 = vector.extract_strided_slice %29 {offsets = [0, 0], sizes = [8, 1], strides = [1, 1]} : vector<8x4xf32> to vector<8x1xf32>
    %31 = arith.mulf %5, %30 : vector<8x1xf32>
    %cst_10 = arith.constant 1.000000e+00 : f32
    %32 = vector.broadcast %cst_10 : f32 to vector<8x1xf32>
    %33 = arith.subf %32, %5 : vector<8x1xf32>
    %34 = vector.extract_strided_slice %29 {offsets = [0, 1], sizes = [8, 1], strides = [1, 1]} : vector<8x4xf32> to vector<8x1xf32>
    %35 = arith.mulf %33, %34 : vector<8x1xf32>
    %36 = arith.addf %31, %35 : vector<8x1xf32>
    %c0_11 = arith.constant 0 : index
    %c0_12 = arith.constant 0 : index
    %37 = vector.load %arg7[%c0_11, %c0_12] : memref<1x1xf32, #tpu.memory_space<vmem>>, vector<1x1xf32>
    %38 = arith.mulf %36, %13 : vector<8x1xf32>
    %39 = vector.shape_cast %38 : vector<8x1xf32> to vector<1x8x1xf32>
    %cst_13 = arith.constant dense<0.000000e+00> : vector<1xf32>
    %40 = vector.multi_reduction <add>, %39, %cst_13 [1, 2] : vector<1x8x1xf32> to vector<1xf32>
    %41 = vector.shape_cast %40 : vector<1xf32> to vector<1x1x1xf32>
    %42 = vector.extract %41[0, 0, 0] : f32 from vector<1x1x1xf32>
    %43 = vector.broadcast %42 : f32 to vector<1x1xf32>
    %44 = arith.addf %37, %43 : vector<1x1xf32>
    %c0_14 = arith.constant 0 : index
    %c0_15 = arith.constant 0 : index
    %45 = vector.load %arg7[%c0_14, %c0_15] : memref<1x1xf32, #tpu.memory_space<vmem>>, vector<1x1xf32>
    tpu.vector_store %arg7[%c0_14, %c0_15], %44 {strides = array<i32>} : memref<1x1xf32, #tpu.memory_space<vmem>>, vector<1x1xf32>,
    %cst_16 = arith.constant 5.000000e-01 : f32
    %46 = vector.broadcast %cst_16 : f32 to vector<8x4xf32>
    %47 = arith.mulf %3, %46 : vector<8x4xf32>
    %cst_17 = arith.constant 5.000000e-01 : f32
    %48 = vector.broadcast %cst_17 : f32 to vector<8x4xf32>
    %49 = arith.mulf %4, %48 : vector<8x4xf32>
    %cst_18 = arith.constant dense<0xFF800000> : vector<8xf32>
    %50 = vector.multi_reduction <maximumf>, %49, %cst_18 [1] : vector<8x4xf32> to vector<8xf32>
    %51 = vector.shape_cast %50 : vector<8xf32> to vector<8x1xf32>
    %52 = vector.broadcast %51 : vector<8x1xf32> to vector<8x4xf32>
    %53 = arith.subf %49, %52 : vector<8x4xf32>
    %54 = math.exp %53 : vector<8x4xf32>
    %cst_19 = arith.constant dense<0.000000e+00> : vector<8xf32>
    %55 = vector.multi_reduction <add>, %54, %cst_19 [1] : vector<8x4xf32> to vector<8xf32>
    %56 = vector.shape_cast %55 : vector<8xf32> to vector<8x1xf32>
    %57 = tpu.reciprocal %56 : vector<8x1xf32> -> vector<8x1xf32>
    %58 = vector.broadcast %57 : vector<8x1xf32> to vector<8x4xf32>
    %59 = arith.mulf %54, %58 : vector<8x4xf32>
    %cst_20 = arith.constant dense<0xFF800000> : vector<8xf32>
    %60 = vector.multi_reduction <maximumf>, %47, %cst_20 [1] : vector<8x4xf32> to vector<8xf32>
    %61 = vector.shape_cast %60 : vector<8xf32> to vector<8x1xf32>
    %62 = vector.broadcast %61 : vector<8x1xf32> to vector<8x4xf32>
    %63 = arith.subf %47, %62 : vector<8x4xf32>
    %64 = vector.broadcast %61 : vector<8x1xf32> to vector<8x4xf32>
    %65 = arith.subf %47, %64 : vector<8x4xf32>
    %66 = math.exp %65 : vector<8x4xf32>
    %cst_21 = arith.constant dense<0.000000e+00> : vector<8xf32>
    %67 = vector.multi_reduction <add>, %66, %cst_21 [1] : vector<8x4xf32> to vector<8xf32>
    %68 = vector.shape_cast %67 : vector<8xf32> to vector<8x1xf32>
    %69 = math.log %68 : vector<8x1xf32>
    %70 = vector.broadcast %69 : vector<8x1xf32> to vector<8x4xf32>
    %71 = arith.subf %63, %70 : vector<8x4xf32>
    %c0_22 = arith.constant 0 : index
    %c0_23 = arith.constant 0 : index
    %72 = vector.load %arg8[%c0_22, %c0_23] : memref<1x1xf32, #tpu.memory_space<vmem>>, vector<1x1xf32>
    %73 = arith.mulf %59, %71 : vector<8x4xf32>
    %74 = vector.broadcast %13 : vector<8x1xf32> to vector<8x4xf32>
    %75 = arith.mulf %73, %74 : vector<8x4xf32>
    %76 = vector.shape_cast %75 : vector<8x4xf32> to vector<1x8x4xf32>
    %cst_24 = arith.constant dense<0.000000e+00> : vector<1xf32>
    %77 = vector.multi_reduction <add>, %76, %cst_24 [1, 2] : vector<1x8x4xf32> to vector<1xf32>
    %78 = vector.shape_cast %77 : vector<1xf32> to vector<1x1x1xf32>
    %79 = vector.extract %78[0, 0, 0] : f32 from vector<1x1x1xf32>
    %80 = vector.broadcast %79 : f32 to vector<1x1xf32>
    %81 = arith.addf %72, %80 : vector<1x1xf32>
    %c0_25 = arith.constant 0 : index
    %c0_26 = arith.constant 0 : index
    %82 = vector.load %arg8[%c0_25, %c0_26] : memref<1x1xf32, #tpu.memory_space<vmem>>, vector<1x1xf32>
    tpu.vector_store %arg8[%c0_25, %c0_26], %81 {strides = array<i32>} : memref<1x1xf32, #tpu.memory_space<vmem>>, vector<1x1xf32>,
    %c0_i32_27 = arith.constant 0 : i32
    %83 = arith.cmpi eq, %arg0, %c0_i32_27 : i32
    %84 = arith.extui %83 : i1 to i32
    %c0_i32_28 = arith.constant 0 : i32
    %85 = arith.cmpi ne, %84, %c0_i32_28 : i32
    scf.if %85 {
      %c0_29 = arith.constant 0 : index
      %c0_30 = arith.constant 0 : index
      %86 = vector.load %arg7[%c0_29, %c0_30] : memref<1x1xf32, #tpu.memory_space<vmem>>, vector<1x1xf32>
      %cst_31 = arith.constant 0.000000e+00 : f32
      %87 = vector.broadcast %cst_31 : f32 to vector<1x1xf32>
      %88 = arith.subf %87, %86 : vector<1x1xf32>
      %cst_32 = arith.constant 8.000000e+00 : f32
      %89 = vector.broadcast %cst_32 : f32 to vector<1x1xf32>
      %90 = arith.divf %88, %89 : vector<1x1xf32>
      %c0_33 = arith.constant 0 : index
      %c0_34 = arith.constant 0 : index
      %91 = vector.load %arg4[%c0_33, %c0_34] : memref<1x1xf32, #tpu.memory_space<vmem>>, vector<1x1xf32>
      tpu.vector_store %arg4[%c0_33, %c0_34], %90 {strides = array<i32>} : memref<1x1xf32, #tpu.memory_space<vmem>>, vector<1x1xf32>,
      %c0_35 = arith.constant 0 : index
      %c0_36 = arith.constant 0 : index
      %92 = vector.load %arg8[%c0_35, %c0_36] : memref<1x1xf32, #tpu.memory_space<vmem>>, vector<1x1xf32>
      %cst_37 = arith.constant -4.000000e+00 : f32
      %93 = vector.broadcast %cst_37 : f32 to vector<1x1xf32>
      %94 = arith.mulf %93, %92 : vector<1x1xf32>
      %cst_38 = arith.constant 8.000000e+00 : f32
      %95 = vector.broadcast %cst_38 : f32 to vector<1x1xf32>
      %96 = arith.divf %94, %95 : vector<1x1xf32>
      %c0_39 = arith.constant 0 : index
      %c0_40 = arith.constant 0 : index
      %97 = vector.load %arg5[%c0_39, %c0_40] : memref<1x1xf32, #tpu.memory_space<vmem>>, vector<1x1xf32>
      tpu.vector_store %arg5[%c0_39, %c0_40], %96 {strides = array<i32>} : memref<1x1xf32, #tpu.memory_space<vmem>>, vector<1x1xf32>,
    } else {
    }
    return
  }
  func.func @transform_0(%arg0: i32) -> (i32, i32) {
    %c0_i32 = arith.constant 0 : i32
    %c0_i32_0 = arith.constant 0 : i32
    return %arg0, %c0_i32 : i32, i32
  }
  func.func @transform_1(%arg0: i32) -> (i32, i32) {
    %c0_i32 = arith.constant 0 : i32
    %c0_i32_0 = arith.constant 0 : i32
    return %arg0, %c0_i32 : i32, i32
  }
  func.func @transform_2(%arg0: i32) -> (i32, i32) {
    %c0_i32 = arith.constant 0 : i32
    %c0_i32_0 = arith.constant 0 : i32
    return %arg0, %c0_i32 : i32, i32
  }
  func.func @transform_3(%arg0: i32) -> (i32, i32) {
    %c0_i32 = arith.constant 0 : i32
    %c0_i32_0 = arith.constant 0 : i32
    %c0_i32_1 = arith.constant 0 : i32
    return %c0_i32, %c0_i32_0 : i32, i32
  }
  func.func @transform_4(%arg0: i32) -> (i32, i32) {
    %c0_i32 = arith.constant 0 : i32
    %c0_i32_0 = arith.constant 0 : i32
    %c0_i32_1 = arith.constant 0 : i32
    return %c0_i32, %c0_i32_0 : i32, i32
  }
  func.func @transform_5(%arg0: i32) -> (i32, i32) {
    %c0_i32 = arith.constant 0 : i32
    %c0_i32_0 = arith.constant 0 : i32
    return %arg0, %c0_i32 : i32, i32
  }
}

</mosaic_0001>

<bundles_post_ra>
// kernel: tpu_custom_call.1
= control target key start
LH: loop header
LB: loop body
LE: loop exit
PB: predicated region body
PF: predicated region fallthrough
CT: control target
= control target key end

     0   :  { %11 = vsyncpa [#allocation5], 0  ;;  %vm37_vm0 = vcmask 31744   ;;  %s295_s0 = inlined_call_operand.vmem [shape: f32[8,4], index: 0, kind: input, shape index: {}]   ;;  %s296_s1 = inlined_call_operand.vmem [shape: f32[8,4], index: 1, kind: input, shape index: {}]   ;;  %s297_s2 = inlined_call_operand.vmem [shape: f32[8,1], index: 2, kind: input, shape index: {}]   ;;  %s298_s3 = inlined_call_operand.hbm [shape: f32[1,1], index: 3, kind: output, shape index: {0}]   ;;  %s299_s4 = inlined_call_operand.hbm [shape: f32[1,1], index: 4, kind: output, shape index: {1}]   ;;  %s300_s5 = inlined_call_operand.vmem [shape: f32[8,4], index: 5, kind: output, shape index: {2}]  }
   0x1   :  { %v26_v0 = vld [vmem:[%s295_s0] sm:$0xff] }
   0x2   :  { %v27_v1 = vld [vmem:[%s296_s1] sm:$0xff] }
   0x3   :  { %12 = vsyncpa [#allocation7], 0  ;;  %v38_v2 = vsel %vm37_vm0, %v26_v0, -inf  ;;  %v79_v3 = vmul.f32 0.5, %v27_v1  ;;  %v78_v4 = vmul.f32 0.5, %v26_v0  ;;  %s229_s22 = smov 127  }
   0x4   :  { %39 = vmax.xlane.f32.xlu0 %v38_v2  ;;  %v28_v31 = vld [vmem:[%s297_s2] sm:$0xff]  ;;  %vm63_vm1 = vcmask 7168   ;;  %vm23_vm2 = vcmask 0   ;;  %v230_v44 = vmov 0.0   ;;  %s231_s25 = smov [#allocation4]   ;;  %s232_s27 = smov [#allocation6]  }
   0x5   :  { %v80_v5 = vsel %vm37_vm0, %v79_v3, -inf  ;;  %v91_v6 = vsel %vm37_vm0, %v78_v4, -inf  ;;  %v54_v33 = vsub.f32 1.0, %v28_v31  ;;  %24 = vst.msk [vmem:[#allocation2] sm:$0x1] %vm23_vm2, %v230_v44  ;;  %s137_s26 = sshll.u32 %s231_s25, 4  ;;  %s138_s26 = int_to_ptr.vmem [resolvable:$true] %s137_s26 }
   0x6   :  { %81 = vmax.xlane.f32.xlu1 %v80_v5  ;;  %25 = vst.msk [vmem:[#allocation3] sm:$0x1] %vm23_vm2, %v230_v44  ;;  %s147_s28 = sshll.u32 %s232_s27, 4  ;;  %s185_s29 = scalar_lea.vmem %s138_s26, 16  ;;  %s148_s28 = int_to_ptr.vmem [resolvable:$true] %s147_s28 }
   0x7   :  { %p186_p0 = scmp.ne.s32.totalorder %s138_s26, %s185_s29  ;;  %s189_s30 = scalar_lea.vmem %s138_s26, 32 }
   0x8   :  { %92 = vmax.xlane.f32.xlu0 %v91_v6  ;;  %p190_p1 = scmp.lt.s32.totalorder %s138_s26, %s138_s26  ;;  %p191_p2 = scmp.lt.s32.totalorder %s189_s30, %s185_s29 }
   0xa   :  { %p192_p3 = por %p191_p2, %p190_p1 }
   0xc   :  { %v61_v59 = vld [vmem:[#allocation2] sm:$0x1]  ;;  %p193_p4 = pnand %p192_p3, %p186_p0 }
   0xd   :  { %v103_v62 = vld [vmem:[#allocation3] sm:$0x1] }
  0x8d   :  { %v40_v7 = vpop.xlane.xlu0 %39 }
  0x8e   :  { %v41_v8 = vsub.f32 %v26_v0, %v40_v7 }
  0x8f   :  { %v82_v9 = vpop.xlane.xlu1 %81 }
  0x90   :  { %v42_v10 = vmul.f32 1.442695, %v41_v8  ;;  %v83_v11 = vsub.f32 %v79_v3, %v82_v9 }
  0x91   :  { %v93_v12 = vpop.xlane.xlu0 %92 }
  0x92   :  { %171 = vpow2.f32 %v42_v10  ;;  %v84_v13 = vmul.f32 1.442695, %v83_v11  ;;  %v94_v14 = vsub.f32 %v78_v4, %v93_v12 }
  0x94   :  { %173 = vpow2.f32 %v84_v13  ;;  %v95_v15 = vmul.f32 1.442695, %v94_v14 }
  0x96   :  { %175 = vpow2.f32 %v95_v15 }
  0x9f   :  { %v172_v16 = vpop.eup %171 }
  0xa0   :  { %v44_v17 = vsel %vm37_vm0, %v172_v16, 0.0 }
  0xa1   :  { %v174_v18 = vpop.eup %173  ;;  %45 = vadd.xlane.f32.xlu1 %v44_v17 }
  0xa2   :  { %v86_v19 = vsel %vm37_vm0, %v174_v18, 0.0 }
  0xa3   :  { %v176_v20 = vpop.eup %175 }
  0xa4   :  { %v97_v21 = vsel %vm37_vm0, %v176_v20, 0.0 }
  0xa5   :  { %87 = vadd.xlane.f32.xlu1 %v86_v19  ;;  %98 = vadd.xlane.f32.xlu0 %v97_v21 }
 0x12a   :  { %v46_v22 = vpop.xlane.xlu1 %45 }
 0x12b   :  { %177 = vrcp.f32 %v46_v22 }
 0x12c   :  { %179 = vlog2.f32 %v46_v22 }
 0x12e   :  { %v99_v28 = vpop.xlane.xlu0 %98  ;;  %v88_v29 = vpop.xlane.xlu1 %87 }
 0x12f   :  { %181 = vlog2.f32 %v99_v28 }
 0x130   :  { %183 = vrcp.f32 %v88_v29 }
 0x138   :  { %v178_v23 = vpop.eup %177 }
 0x139   :  { %v180_v24 = vpop.eup %179  ;;  %v48_v25 = vmul.f32 %v178_v23, %v172_v16 }
 0x13a   :  { %v51_v26 = vmul.f32 0.6931472, %v180_v24 }
 0x13b   :  { %49 = vst.msk [vmem:[%s300_s5] sm:$0xff] %vm37_vm0, %v48_v25 }
 0x13c   :  { %v52_v27 = vsub.f32 %v41_v8, %v51_v26  ;;  %v182_v30 = vpop.eup %181 }
 0x13d   :  { %v101_v32 = vmul.f32 0.6931472, %v182_v30  ;;  %v184_v34 = vpop.eup %183 }
 0x13e   :  { %56 = vrot.lane.b32.xlu0 %v52_v27, %s229_s22  ;;  %v53_v37 = vmul.f32 %v52_v27, %v28_v31  ;;  %v90_v40 = vmul.f32 %v184_v34, %v174_v18 }
 0x13f   :  { %v102_v38 = vsub.f32 %v94_v14, %v101_v32 }
 0x141   :  { %v104_v42 = vmul.f32 %v102_v38, %v90_v40 }
 0x143   :  { %v106_v43 = vsel %vm37_vm0, %v104_v42, 0.0 }
 0x1b0   :  { %v57_v35 = vpop.permute.xlu0 %56 }
 0x1b1   :  { %v59_v36 = vmul.f32 %v57_v35, %v54_v33 }
 0x1b3   :  { %v60_v39 = vadd.f32 %v59_v36, %v53_v37 }
 0x1b5   :  { %v64_v41 = vsel %vm63_vm1, %v60_v39, 0.0 }
 0x1b6   :  { %65 = vadd.xlane.f32.xlu1 %v64_v41 }
 0x1ba   :  { %107 = vadd.xlane.f32.xlu1 %v106_v43 }
 0x23f   :  { %v66_v45 = vpop.xlane.xlu1 %65 }
 0x240   :  { %v67_v46 = vrot.slane %v66_v45, 4 }
 0x242   :  { %v68_v47 = vadd.f32 %v67_v46, %v66_v45 }
 0x243   :  { %v108_v48 = vpop.xlane.xlu1 %107 }
 0x244   :  { %v69_v49 = vrot.slane %v68_v47, 2  ;;  %v109_v50 = vrot.slane %v108_v48, 4 }
 0x246   :  { %v110_v51 = vadd.f32 %v109_v50, %v108_v48  ;;  %v70_v52 = vadd.f32 %v69_v49, %v68_v47 }
 0x248   :  { %v111_v53 = vrot.slane %v110_v51, 2  ;;  %v71_v54 = vrot.slane %v70_v52, 1 }
 0x24a   :  { %v112_v55 = vadd.f32 %v111_v53, %v110_v51  ;;  %v72_v56 = vadd.f32 %v71_v54, %v70_v52 }
 0x24c   :  { %163 = vpush %v72_v56  ;;  %v113_v57 = vrot.slane %v112_v55, 1 }
 0x24e   :  { %v114_v58 = vadd.f32 %v113_v57, %v112_v55 }
 0x250   :  { %165 = vpush %v114_v58 }
 0x27d   :  { %s164_s2 = spop %163 }
 0x27e   :  { %v74_v60 = vstv %s164_s2 }
 0x27f   :  { %v75_v61 = vadd.f32 %v74_v60, %v61_v59 }
 0x281   :  { %77 = vst.msk [vmem:[#allocation2] sm:$0x1] %vm23_vm2, %v75_v61  ;;  %s166_s5 = spop %165 }
 0x282   :  { %v116_v63 = vstv %s166_s5 }
 0x283   :  { %v117_v0 = vadd.f32 %v116_v63, %v103_v62 }
 0x285   :  { %118 = vst.msk [vmem:[#allocation3] sm:$0x1] %vm23_vm2, %v117_v0 }
 0x288   :  { %v122_v1 = vld [vmem:[#allocation2] sm:$0x1] }
 0x289   :  { %v123_v2 = vsub.f32 0.0, %v122_v1 }
 0x28b   :  { %v125_v3 = vmul.f32 0.125, %v123_v2 }
 0x28c   :  { %v127_v4 = vld [vmem:[#allocation3] sm:$0x1] }
 0x28d   :  { %126 = vst.msk [vmem:[#allocation4] sm:$0x1] %vm23_vm2, %v125_v3  ;;  %v128_v5 = vmul.f32 -4.0, %v127_v4 }
 0x28e   :  { %196 = shalt.err (!%p193_p4)
}
 0x28f   :  { %140 = dma.vmem_to_hbm [thread:$0]  %s138_s26, 16, %s298_s3, [#allocation5]   ;;  %v129_v6 = vmul.f32 0.125, %v128_v5 }
 0x290   :  { %s205_s8 = scalar_lea.vmem %s148_s28, 16  ;;  %s209_s9 = scalar_lea.vmem %s148_s28, 32 }
 0x291   :  { %130 = vst.msk [vmem:[#allocation6] sm:$0x1] %vm23_vm2, %v129_v6  ;;  %p206_p5 = scmp.ne.s32.totalorder %s148_s28, %s205_s8  ;;  %p210_p6 = scmp.lt.s32.totalorder %s148_s28, %s148_s28 }
 0x292   :  { %p211_p7 = scmp.lt.s32.totalorder %s209_s9, %s205_s8 }
 0x294   :  { %p212_p8 = por %p211_p7, %p210_p6 }
 0x296   :  { %p213_p9 = pnand %p212_p8, %p206_p5 }
 0x298   :  { %216 = shalt.err (!%p213_p9)
}
 0x299   :  { %150 = dma.vmem_to_hbm [thread:$0]  %s148_s28, 16, %s299_s4, [#allocation7]  }
 0x29a   :  { %225 = dma.done.wait [#allocation5], 16  }
 0x29b   :  { %226 = vsyncadd [#allocation5], 4294967280 }
 0x29c   :  { %227 = dma.done.wait [#allocation7], 16  }
 0x29d   :  { %228 = vsyncadd [#allocation7], 4294967280 }
 0x29e   :  { %161 = vsyncpa [#allocation5], 1 }
 0x29f   :  { %162 = vsyncpa [#allocation7], 1 }

</bundles_post_ra>
